<compile_context>
chip_gen: v6e
topology: v6e:2x2x1
jax: 0.10.0
libtpu: 0.0.40
codegen_flags: <defaults>
</compile_context>

<pallas_src>
import functools
import numpy as np
import jax
import jax.numpy as jnp
from jax import lax
from jax.experimental import pallas as pl
from jax.experimental.pallas import tpu as pltpu

_VMEM_LIMIT = 32 * 1024 * 1024  # explicit scoped-VMEM budget (v5e default is 16 MiB)


# ----------------------------------------------------------------------------
# Pallas kernels
# ----------------------------------------------------------------------------
def _dense_kernel(x_ref, w_ref, b_ref, o_ref, *, relu):
    x = x_ref[...]
    if relu:
        x = jnp.maximum(x, 0.0)
    w = w_ref[...]
    if w.dtype == jnp.bfloat16:          # bf16 MXU operands, f32 accumulate
        x = x.astype(jnp.bfloat16)
    o_ref[...] = (
        jnp.dot(x, w, preferred_element_type=jnp.float32) + b_ref[...]
    )


def pallas_dense(x, w, b, relu=False, block_m=512):
    """y = (relu(x) if relu else x) @ w + b.  x:(M,K)  w:(K,N)  b:(1,N) -> f32 (M,N)."""
    M, K = x.shape
    N = w.shape[1]
    kern = functools.partial(_dense_kernel, relu=relu)
    if M <= block_m:
        return pl.pallas_call(
            kern,
            out_shape=jax.ShapeDtypeStruct((M, N), jnp.float32),
            in_specs=[pl.BlockSpec(memory_space=pltpu.MemorySpace.VMEM)] * 3,
            out_specs=pl.BlockSpec(memory_space=pltpu.MemorySpace.VMEM),
            compiler_params=pltpu.CompilerParams(vmem_limit_bytes=_VMEM_LIMIT),
        )(x, w, b)
    # large-M path: M-tiled, weights resident, batch axis parallel (v7x 2nd core)
    return pl.pallas_call(
        kern,
        out_shape=jax.ShapeDtypeStruct((M, N), jnp.float32),
        grid=(pl.cdiv(M, block_m),),
        in_specs=[
            pl.BlockSpec((block_m, K), lambda i: (i, 0)),
            pl.BlockSpec((K, N), lambda i: (0, 0)),
            pl.BlockSpec((1, N), lambda i: (0, 0)),
        ],
        out_specs=pl.BlockSpec((block_m, N), lambda i: (i, 0)),
        compiler_params=pltpu.CompilerParams(
            dimension_semantics=("parallel",), vmem_limit_bytes=_VMEM_LIMIT),
    )(x, w, b)


def _bilabel_kernel(x_ref, w_ref, b_ref, logit_ref, label_ref):
    """bi_labeler = Sequential(ReLU, Linear) with the token argmax fused in.

    w/b are zero-padded to 128 output lanes (real classes = first 2 columns) so the
    logits store is a full-lane vst on v5e; the padding columns are free MXU filler."""
    x = jnp.maximum(x_ref[...], 0.0)
    logits = jnp.dot(x, w_ref[...], preferred_element_type=jnp.float32) + b_ref[...]
    logit_ref[...] = logits
    # torch.argmax over the 2 real classes: class 1 wins only on strict >
    label_ref[...] = (logits[:, 1:2] > logits[:, 0:1]).astype(jnp.int32)


def pallas_bilabeler(x, w_pad, b_pad):
    M = x.shape[0]
    N = w_pad.shape[1]
    logits, labels = pl.pallas_call(
        _bilabel_kernel,
        out_shape=(jax.ShapeDtypeStruct((M, N), jnp.float32),
                   jax.ShapeDtypeStruct((M, 1), jnp.int32)),
        in_specs=[pl.BlockSpec(memory_space=pltpu.MemorySpace.VMEM)] * 3,
        out_specs=(pl.BlockSpec(memory_space=pltpu.MemorySpace.VMEM),
                   pl.BlockSpec(memory_space=pltpu.MemorySpace.VMEM)),
        compiler_params=pltpu.CompilerParams(vmem_limit_bytes=_VMEM_LIMIT),
    )(x, w_pad, b_pad)
    return logits[:, :2], labels[:, 0]


def _bilstm_kernel(xp_ref, len_ref, whh_ref, out_ref, hn_ref,
                   h_scr, c_scr, seqf_scr, seqb_scr, *, T, H):
    """Fwd+bwd LSTM recurrence in ONE kernel invocation (no grid).

    xp_ref : (T, B, 8H) f32 pre-projection (bias included), VMEM-resident
    len_ref: (B, 1) int32 sequence lengths
    whh_ref: (2H, 8H) bf16 block-diagonal fused recurrent weight
    out_ref: (T, B, 2H) f32 output sequence (written once at the end)
    hn_ref : (B, 2H) f32 final hidden state [fwd | bwd]
    """
    h_scr[...] = jnp.zeros_like(h_scr)
    c_scr[...] = jnp.zeros_like(c_scr)
    lens = len_ref[...]                       # (B, 1) int32, loaded once
    whh = whh_ref[...]                        # resident bf16 weight

    def gate_step(gates, h_prev, c_prev, keep):
        # gate column order (i, f, o, g): one contiguous sigmoid over 3H + one tanh
        sig = jax.nn.sigmoid(gates[:, : 3 * H])
        g = jnp.tanh(gates[:, 3 * H:])
        i = sig[:, :H]
        f = sig[:, H: 2 * H]
        o = sig[:, 2 * H: 3 * H]
        c_new = f * c_prev + i * g
        h_new = o * jnp.tanh(c_new)
        # freeze state past sequence length (pack_padded_sequence semantics)
        return jnp.where(keep, h_new, h_prev), jnp.where(keep, c_new, c_prev)

    def body(t, carry):
        tb = T - 1 - t
        hc = h_scr[...]                       # (B, 2H)  [fwd | bwd], no concat needed
        cc = c_scr[...]
        # one MXU pass serves both directions (block-diagonal fused W_hh)
        rec = jnp.dot(hc.astype(jnp.bfloat16), whh,
                      preferred_element_type=jnp.float32)        # (B, 8H)
        xf = xp_ref[t]                        # (B, 8H) projection @ forward time t
        xb = xp_ref[tb]                       # (B, 8H) projection @ forward time T-1-t
        g_f = xf[:, : 4 * H] + rec[:, : 4 * H]
        g_b = xb[:, 4 * H:] + rec[:, 4 * H:]
        keep_f = t < lens                     # masks built in-kernel, no mask DMA
        keep_b = tb < lens
        hf, cf = gate_step(g_f, hc[:, :H], cc[:, :H], keep_f)
        hb, cb = gate_step(g_b, hc[:, H:], cc[:, H:], keep_b)
        h_scr[:, :H] = hf
        h_scr[:, H:] = hb
        c_scr[:, :H] = cf
        c_scr[:, H:] = cb
        # packed-sequence semantics: padded positions output zeros
        seqf_scr[t] = jnp.where(keep_f, hf, 0.0)
        seqb_scr[tb] = jnp.where(keep_b, hb, 0.0)
        return carry

    lax.fori_loop(0, T, body, 0, unroll=True)
    # single store of the whole (T, B, 2H) sequence; one HBM writeback at kernel end
    out_ref[...] = jnp.concatenate([seqf_scr[...], seqb_scr[...]], axis=-1)
    hn_ref[...] = h_scr[...]


def fused_bilstm_pallas(xp, lens, w_hh_fused, hidden):
    """Both LSTM directions, all T timesteps, in a single pallas_call.

    xp: (T, B, 8H) pre-projections, lens: (B, 1) int32.
    Returns (out_seq (T,B,2H) in forward time order, hn (B,2H))."""
    T, B, G = xp.shape
    H = hidden
    assert G == 8 * H
    kern = functools.partial(_bilstm_kernel, T=T, H=H)
    return pl.pallas_call(
        kern,
        out_shape=(jax.ShapeDtypeStruct((T, B, 2 * H), jnp.float32),
                   jax.ShapeDtypeStruct((B, 2 * H), jnp.float32)),
        in_specs=[pl.BlockSpec(memory_space=pltpu.MemorySpace.VMEM)] * 3,
        out_specs=(pl.BlockSpec(memory_space=pltpu.MemorySpace.VMEM),
                   pl.BlockSpec(memory_space=pltpu.MemorySpace.VMEM)),
        scratch_shapes=[
            pltpu.VMEM((B, 2 * H), jnp.float32),   # h state  [fwd | bwd]
            pltpu.VMEM((B, 2 * H), jnp.float32),   # c state  [fwd | bwd]
            pltpu.VMEM((T, B, H), jnp.float32),    # fwd output sequence
            pltpu.VMEM((T, B, H), jnp.float32),    # bwd output sequence
        ],
        compiler_params=pltpu.CompilerParams(vmem_limit_bytes=_VMEM_LIMIT),
    )(xp, lens, w_hh_fused)


# ----------------------------------------------------------------------------
# Model pieces built on the kernels
# ----------------------------------------------------------------------------
def bilstm(x, lengths, params):
    """Bidirectional single-layer LSTM with pack_padded_sequence semantics.

    x: (B, T, D), lengths: (B,) int32.  Returns (out (B,T,2H), hn (B,2H))."""
    B, T, D = x.shape
    H = params["hidden"]
    Bp = ((B + 7) // 8) * 8                 # fill f32 sublanes / MXU rows
    if Bp > B:
        x = jnp.concatenate([x, jnp.zeros((Bp - B, T, D), x.dtype)], axis=0)
        lengths = jnp.concatenate(
            [lengths, jnp.zeros((Bp - B,), lengths.dtype)], axis=0)

    xt = x.transpose(1, 0, 2)               # hoisted time-major transpose (T, Bp, D)
    # fused fwd+bwd input projection: one matmul, 8H lane-dense output; the full
    # (T, Bp, 8H) slab goes to the recurrence kernel unsliced.
    xp = pallas_dense(xt.reshape(T * Bp, D), params["w_ih"], params["b"])
    xp = xp.reshape(T, Bp, 8 * H)
    lens2d = lengths.astype(jnp.int32).reshape(Bp, 1)

    out_seq, hn = fused_bilstm_pallas(xp, lens2d, params["w_hh"], H)
    out = out_seq.transpose(1, 0, 2)[:B]    # (B, T, 2H)
    return out, hn[:B]


def char_lstm_batched(sentence_words, sentence_word_lengths, sentence_word_indices,
                      char_emb, char_lstm_params, batch_size, max_sent_len):
    """CharLSTM.forward batched across all sentences: one bilstm over every word,
    then a single scatter into the (B, S, 2Hc) feature buffer (unsort + pad fused)."""
    n_words_list = [int(w.shape[0]) for w in sentence_words]
    all_words = jnp.concatenate(sentence_words, axis=0)           # (total, L)
    all_lengths = jnp.concatenate(sentence_word_lengths, axis=0)  # (total,)
    embedded = char_emb[all_words]                                # (total, L, E)
    _, hn_all = bilstm(embedded, all_lengths, char_lstm_params)   # (total, 2Hc)

    # hn[indices] = hn  (per sentence)  ==  scatter word j of sentence i to slot indices_i[j]
    sent_ids = jnp.asarray(
        np.repeat(np.arange(batch_size, dtype=np.int32), n_words_list))
    slots = jnp.concatenate(sentence_word_indices, axis=0).astype(jnp.int32)
    feat = jnp.zeros((batch_size, max_sent_len, hn_all.shape[-1]), jnp.float32)
    return feat.at[sent_ids, slots].set(hn_all)                   # (B, S, 2Hc)


def init_bilstm_params(key, input_dim, hidden):
    """Fused-layout BiLSTM params. Gate columns per direction: (i, f, o, g)."""
    ks = jax.random.split(key, 8)
    s = 1.0 / np.sqrt(hidden)

    def u(k, shape):
        return jax.random.uniform(k, shape, jnp.float32, -s, s)

    H = hidden
    w_ih, w_hh, biases = [], [], []
    for i in range(2):                                  # 0 = fwd, 1 = bwd
        w_ih.append(u(ks[4 * i + 0], (input_dim, 4 * H)))        # W_ih^T
        w_hh.append(u(ks[4 * i + 1], (H, 4 * H)))                # W_hh^T
        biases.append(u(ks[4 * i + 2], (1, 4 * H)) + u(ks[4 * i + 3], (1, 4 * H)))

    w_ih_fused = jnp.concatenate(w_ih, axis=1)                    # (D, 8H)
    b_fused = jnp.concatenate(biases, axis=1)                     # (1, 8H), kept f32
    w_hh_fused = jnp.zeros((2 * H, 8 * H), jnp.float32)
    w_hh_fused = w_hh_fused.at[:H, : 4 * H].set(w_hh[0])          # block-diagonal
    w_hh_fused = w_hh_fused.at[H:, 4 * H:].set(w_hh[1])
    return {
        "hidden": H,
        "w_ih": w_ih_fused.astype(jnp.bfloat16),
        "w_hh": w_hh_fused.astype(jnp.bfloat16),
        "b": b_fused,
    }


def end2end_forward(params, sentences, sentence_lengths, sentence_words,
                    sentence_word_lengths, sentence_word_indices):
    B, S = sentences.shape
    word_repr = params["word_emb"][sentences]                    # (B, S, E)

    char_feat = char_lstm_batched(
        sentence_words, sentence_word_lengths, sentence_word_indices,
        params["char_emb"], params["char_lstm"], B, S)
    word_repr = jnp.concatenate([word_repr, char_feat], axis=-1)

    # TODO(synk): Dropout(p=0.5) is identity here (eval semantics); training-mode noise not reproduced.

    lengths_arr = jnp.asarray(sentence_lengths, jnp.int32)
    unpacked, _ = bilstm(word_repr, lengths_arr, params["main_lstm"])   # (B, S, 2H)
    n_hidden = unpacked.shape[-1]

    # bi_labeler (ReLU -> Linear) with the token argmax fused into the same kernel
    logits2, labels = pallas_bilabeler(
        unpacked.reshape(B * S, n_hidden), params["bi_w"], params["bi_b"])
    sentence_outputs = logits2.reshape(B, S, 2).transpose(0, 2, 1)      # (B, 2, S)

    # TODO(synk): region-boundary extraction is data-dependent (variable region count),
    # so it stays on host; only the tiny (B, S) int32 label matrix crosses the boundary.
    sentence_labels = np.asarray(labels.reshape(B, S))
    region_idx = []                                                     # (b, start, end)
    for b in range(B):
        label = sentence_labels[b]
        length = int(sentence_lengths[b])
        for start in range(length):
            if label[start] == 0:
                continue
            for end in range(start + 1, length):
                if label[end - 1] == 0:
                    break
                region_idx.append((b, start, end))

    region_outputs = []
    if region_idx:
        n_regions = len(region_idx)
        bucket = max(8, int(2 ** int(np.ceil(np.log2(n_regions)))))     # fixed-size buckets
        idx = np.array(region_idx + [(0, 0, 1)] * (bucket - n_regions), dtype=np.int32)
        bs = jnp.asarray(idx[:, 0])
        st = jnp.asarray(idx[:, 1])
        en = jnp.asarray(idx[:, 2])
        # on-device CatRepr: [h[start], mean(h[start:end]), h[end-1]] via gathers + prefix sums
        csum = jnp.concatenate(
            [jnp.zeros((B, 1, n_hidden), jnp.float32), jnp.cumsum(unpacked, axis=1)], axis=1)
        first = unpacked[bs, st]                                        # (R, 2H)
        last = unpacked[bs, en - 1]                                     # (R, 2H)
        mean = (csum[bs, en] - csum[bs, st]) / (en - st).astype(jnp.float32)[:, None]
        reprs = jnp.concatenate([first, mean, last], axis=-1)           # (R, 6H)
        region_outputs = pallas_dense(
            reprs, params["rc_w"], params["rc_b"], relu=True)[:n_regions]
    return region_outputs, sentence_outputs


# ----------------------------------------------------------------------------
# Main
# ----------------------------------------------------------------------------
if __name__ == "__main__":
    # small config
    B, S = 2, 8
    n_embeddings, embedding_dim = 50, 32
    char_feat_dim, n_chars = 16, 20
    hidden_size, n_tags = 16, 4
    n_hidden = 2 * hidden_size
    max_word_len = 6

    key = jax.random.PRNGKey(0)
    keys = jax.random.split(key, 16)

    word_emb = jax.random.normal(keys[0], (n_embeddings, embedding_dim), jnp.float32)
    word_emb = word_emb.at[0].set(0.0)                       # padding_idx=0
    char_emb_size = char_feat_dim // 2
    char_emb = jax.random.normal(keys[1], (n_chars, char_emb_size), jnp.float32)
    char_emb = char_emb.at[0].set(0.0)                       # padding_idx=0

    s1 = 1.0 / np.sqrt(n_hidden)
    s2 = 1.0 / np.sqrt(3 * n_hidden)
    # bi-labeler weights pre-padded to 128 output lanes (real classes = first 2 cols)
    bi_w = jnp.zeros((n_hidden, 128), jnp.float32).at[:, :2].set(
        jax.random.uniform(keys[4], (n_hidden, 2), jnp.float32, -s1, s1))
    bi_b = jnp.zeros((1, 128), jnp.float32).at[:, :2].set(
        jax.random.uniform(keys[5], (1, 2), jnp.float32, -s1, s1))
    params = {
        "word_emb": word_emb,
        "char_emb": char_emb,
        "char_lstm": init_bilstm_params(keys[2], char_emb_size, char_feat_dim // 2),
        "main_lstm": init_bilstm_params(keys[3], embedding_dim + char_feat_dim, hidden_size),
        "bi_w": bi_w,
        "bi_b": bi_b,
        "rc_w": jax.random.uniform(keys[6], (3 * n_hidden, n_tags), jnp.float32, -s2, s2),
        "rc_b": jax.random.uniform(keys[7], (1, n_tags), jnp.float32, -s2, s2),
    }

    # inputs (lengths sorted descending, as pack_padded_sequence requires)
    sentence_lengths = [8, 5]
    sentences = jax.random.randint(keys[8], (B, S), 1, n_embeddings)
    pad_mask = jnp.asarray(np.arange(S)[None, :] < np.array(sentence_lengths)[:, None])
    sentences = jnp.where(pad_mask, sentences, 0)

    rng = np.random.RandomState(0)
    sentence_words, sentence_word_lengths, sentence_word_indices = [], [], []
    for i in range(B):
        n_words = sentence_lengths[i]
        lens = np.sort(rng.randint(1, max_word_len + 1, size=n_words))[::-1].copy()
        words = np.zeros((n_words, max_word_len), dtype=np.int32)
        for j in range(n_words):
            words[j, : lens[j]] = rng.randint(1, n_chars, size=lens[j])
        perm = rng.permutation(n_words).astype(np.int32)
        sentence_words.append(jnp.asarray(words))
        sentence_word_lengths.append(jnp.asarray(lens.astype(np.int32)))
        sentence_word_indices.append(jnp.asarray(perm))

    region_outputs, sentence_outputs = end2end_forward(
        params, sentences, sentence_lengths, sentence_words,
        sentence_word_lengths, sentence_word_indices,
    )
    jax.block_until_ready(sentence_outputs)
    if not isinstance(region_outputs, list):
        jax.block_until_ready(region_outputs)
    print("KERNEL_OK")
</pallas_src>

<mosaic_0001>
module attributes {stable_mosaic.version = 11 : i64} {
  func.func @_dense_kernel(%arg0: memref<96x8xf32, #tpu.memory_space<vmem>>, %arg1: memref<8x64xbf16, #tpu.memory_space<vmem>>, %arg2: memref<1x64xf32, #tpu.memory_space<vmem>>, %arg3: memref<96x64xf32, #tpu.memory_space<vmem>>) attributes {dimension_semantics = [], scalar_prefetch = 0 : i64, scratch_operands = 0 : i64, tpu.core_type = #tpu.core_type<tc>} {
    %c0 = arith.constant 0 : index
    %c0_0 = arith.constant 0 : index
    %0 = vector.load %arg0[%c0, %c0_0] : memref<96x8xf32, #tpu.memory_space<vmem>>, vector<96x8xf32>
    %c0_1 = arith.constant 0 : index
    %c0_2 = arith.constant 0 : index
    %1 = vector.load %arg1[%c0_1, %c0_2] : memref<8x64xbf16, #tpu.memory_space<vmem>>, vector<8x64xbf16>
    %2 = arith.truncf %0 : vector<96x8xf32> to vector<96x8xbf16>
    %cst = arith.constant dense<0.000000e+00> : vector<96x64xf32>
    %3 = tpu.matmul %2, %1, %cst {dimension_numbers = #tpu.dot_dimension_numbers<[1], [0], [0], [1], [0, 0, 1, 1], [], []>} : vector<96x8xbf16>, vector<8x64xbf16>, vector<96x64xf32> -> vector<96x64xf32>
    %c0_3 = arith.constant 0 : index
    %c0_4 = arith.constant 0 : index
    %4 = vector.load %arg2[%c0_3, %c0_4] : memref<1x64xf32, #tpu.memory_space<vmem>>, vector<1x64xf32>
    %5 = vector.broadcast %4 : vector<1x64xf32> to vector<96x64xf32>
    %6 = arith.addf %3, %5 : vector<96x64xf32>
    %c0_5 = arith.constant 0 : index
    %c0_6 = arith.constant 0 : index
    %7 = vector.load %arg3[%c0_5, %c0_6] : memref<96x64xf32, #tpu.memory_space<vmem>>, vector<96x64xf32>
    tpu.vector_store %arg3[%c0_5, %c0_6], %6 {strides = array<i32>} : memref<96x64xf32, #tpu.memory_space<vmem>>, vector<96x64xf32>,
    return
  }
}

</mosaic_0001>

<bundles_post_ra>
// kernel: tpu_custom_call.1
= control target key start
LH: loop header
LB: loop body
LE: loop exit
PB: predicated region body
PF: predicated region fallthrough
CT: control target
= control target key end

     0   :  { %vm60_vm0 = vcmask 1043456   ;;  %vm41_vm1 = vcmask 64512   ;;  %vm145_vm2 = vcmask 523264   ;;  %s310_s1 = inlined_call_operand.vmem [shape: bf16[8,64], index: 1, kind: input, shape index: {}]   ;;  %s311_s0 = inlined_call_operand.vmem [shape: f32[96,8], index: 0, kind: input, shape index: {}]   ;;  %s312_s2 = inlined_call_operand.vmem [shape: f32[1,64], index: 2, kind: input, shape index: {}]   ;;  %s313_s3 = inlined_call_operand.vmem [shape: f32[96,64], index: 3, kind: output, shape index: {}]  }
   0x1   :  { %v27_v0 = vld [vmem:[%s310_s1] sm:$0xf]  ;;  %v20_v2 = vld [vmem:[%s311_s0 + $0x28] sm:$0xff]  ;;  %v21_v5 = vld [vmem:[%s311_s0 + $0x30] sm:$0xff] }
   0x2   :  { %v19_v1 = vld [vmem:[%s311_s0 + $0x20] sm:$0xff]  ;;  %193 = vmatprep.subr.msk.bf16.mxu1 %vm60_vm0, %v27_v0  ;;  %v62_v3 = vsel %vm60_vm0, %v27_v0, 0  ;;  %192 = vmatprep.subr.msk.bf16.mxu0 %vm60_vm0, %v27_v0  ;;  %v22_v6 = vld [vmem:[%s311_s0 + $0x38] sm:$0xff]  ;;  %v16_v9 = vld [vmem:[%s311_s0 + $0x8] sm:$0xff] }
   0x3   :  { %v30_v4 = vpack.c.bf16 %v20_v2, %v19_v1  ;;  %v15_v7 = vld [vmem:[%s311_s0] sm:$0xff]  ;;  %191 = vmatpush3.bf16.msra.mxu1 %v62_v3  ;;  %177 = vmatpush3.bf16.msra.mxu0 %v62_v3  ;;  %v31_v8 = vpack.c.bf16 %v22_v6, %v21_v5  ;;  %v17_v10 = vld [vmem:[%s311_s0 + $0x10] sm:$0xff]  ;;  %v18_v11 = vld [vmem:[%s311_s0 + $0x18] sm:$0xff] }
   0x4   :  { %v28_v12 = vpack.c.bf16 %v16_v9, %v15_v7  ;;  %v29_v13 = vpack.c.bf16 %v18_v11, %v17_v10  ;;  %v23_v14 = vld [vmem:[%s311_s0 + $0x40] sm:$0xff]  ;;  %v24_v15 = vld [vmem:[%s311_s0 + $0x48] sm:$0xff]  ;;  %v25_v17 = vld [vmem:[%s311_s0 + $0x50] sm:$0xff] }
   0x5   :  { %182 = vmatprep.mubr.msk.bf16.mxu1 %vm41_vm1, %v30_v4  ;;  %v32_v16 = vpack.c.bf16 %v24_v15, %v23_v14  ;;  %v26_v18 = vld [vmem:[%s311_s0 + $0x58] sm:$0xff]  ;;  %v162_v20 = vld [vmem:[%s312_s2] ss:$0 sm:$0xff] }
   0x6   :  { %183 = vmatmul.mubr.msk.bf16.vlgmr.msra.gmra.mxu1 %vm41_vm1, %v31_v8  ;;  %178 = vmatprep.mubr.msk.bf16.mxu0 %vm41_vm1, %v28_v12  ;;  %v33_v19 = vpack.c.bf16 %v26_v18, %v25_v17 }
   0x7   :  { %179 = vmatmul.mubr.msk.bf16.vlgmr.msra.gmra.mxu0 %vm41_vm1, %v29_v13  ;;  %186 = vmatprep.mubr.msk.bf16.mxu1 %vm41_vm1, %v32_v16 }
   0xe   :  { %187 = vmatmul.mubr.msk.bf16.gmra.mxu1 %vm41_vm1, %v33_v19 }
  0xc6   :  { %v184_v21 = vpop.f32.mrf.mxu1 }
  0xc7   :  { %v123_v22 = vadd.f32 %v184_v21, %v162_v20  ;;  %v180_v23 = vpop.f32.mrf.mxu0 }
  0xc8   :  { %v107_v24 = vadd.f32 %v180_v23, %v162_v20  ;;  %v114_v25 = vpop.f32.mrf.mxu1 }
  0xc9   :  { %152 = vst.msk [vmem:[%s313_s3 + $0x30] sm:$0xff] %vm145_vm2, %v123_v22  ;;  %v115_v26 = vadd.f32 %v162_v20, %v114_v25  ;;  %v98_v27 = vpop.f32.mrf.mxu0 }
  0xca   :  { %148 = vst.msk [vmem:[%s313_s3 + $0x10] sm:$0xff] %vm145_vm2, %v107_v24  ;;  %v99_v28 = vadd.f32 %v162_v20, %v98_v27  ;;  %v185_v29 = vpop.f32.mrf.mxu1 }
  0xcb   :  { %150 = vst.msk [vmem:[%s313_s3 + $0x20] sm:$0xff] %vm145_vm2, %v115_v26  ;;  %v126_v30 = vadd.f32 %v185_v29, %v162_v20  ;;  %v181_v31 = vpop.f32.mrf.mxu0 }
  0xcc   :  { %146 = vst.msk [vmem:[%s313_s3] sm:$0xff] %vm145_vm2, %v99_v28  ;;  %v110_v32 = vadd.f32 %v181_v31, %v162_v20  ;;  %v117_v33 = vpop.f32.mrf.mxu1 }
  0xcd   :  { %153 = vst.msk [vmem:[%s313_s3 + $0x38] sm:$0xff] %vm145_vm2, %v126_v30  ;;  %v118_v34 = vadd.f32 %v162_v20, %v117_v33  ;;  %v101_v35 = vpop.f32.mrf.mxu0 }
  0xce   :  { %149 = vst.msk [vmem:[%s313_s3 + $0x18] sm:$0xff] %vm145_vm2, %v110_v32  ;;  %v102_v36 = vadd.f32 %v162_v20, %v101_v35  ;;  %v188_v37 = vpop.f32.mrf.mxu1 }
  0xcf   :  { %151 = vst.msk [vmem:[%s313_s3 + $0x28] sm:$0xff] %vm145_vm2, %v118_v34  ;;  %v139_v38 = vadd.f32 %v188_v37, %v162_v20 }
  0xd0   :  { %147 = vst.msk [vmem:[%s313_s3 + $0x8] sm:$0xff] %vm145_vm2, %v102_v36  ;;  %v130_v39 = vpop.f32.mrf.mxu1 }
  0xd1   :  { %156 = vst.msk [vmem:[%s313_s3 + $0x50] sm:$0xff] %vm145_vm2, %v139_v38  ;;  %v131_v40 = vadd.f32 %v162_v20, %v130_v39 }
  0xd2   :  { %v189_v41 = vpop.f32.mrf.mxu1 }
  0xd3   :  { %154 = vst.msk [vmem:[%s313_s3 + $0x40] sm:$0xff] %vm145_vm2, %v131_v40  ;;  %v142_v42 = vadd.f32 %v189_v41, %v162_v20 }
  0xd4   :  { %v133_v43 = vpop.f32.mrf.mxu1 }
  0xd5   :  { %157 = vst.msk [vmem:[%s313_s3 + $0x58] sm:$0xff] %vm145_vm2, %v142_v42  ;;  %v134_v44 = vadd.f32 %v162_v20, %v133_v43 }
  0xd7   :  { %155 = vst.msk [vmem:[%s313_s3 + $0x48] sm:$0xff] %vm145_vm2, %v134_v44 }

</bundles_post_ra>
